<compile_context>
chip_gen: v7x
topology: tpu7x:2x2x1
jax: 0.10.0
libtpu: 0.0.40
codegen_flags: <defaults>
</compile_context>

<pallas_src>
import functools

import jax
import jax.numpy as jnp
from jax.experimental import pallas as pl
from jax.experimental.pallas import tpu as pltpu


# ----------------------------------------------------------------------------
# Fused Pallas kernel: TGCN cell (h_prev == 0) + relu + linear1_node head
# ----------------------------------------------------------------------------
def fused_tgcn_head_kernel(x_ref, a_ref, w_ref, b_ref, uc_ref, ub_ref,
                           wo_ref, bo_ref, out_ref, *, hidden):
    """One fused TGCN step + output head for a row-tile of nodes.

    x_ref : (M, F)        node features (last lookback step), full array
    a_ref : (tm, M)       row-tile of dense gcn_norm adjacency
    w_ref : (F, 2H)       packed GCNConv weights  [W_z | W_h~]
    b_ref : (1, 2H)       packed GCNConv biases
    uc_ref: (2H, 2H)      block-diag gate Linear weights (conv-output part only)
    ub_ref: (1, 2H)       packed gate Linear biases
    wo_ref: (H, OUT_W)    [I_H | W1 | 0]  -> lane-dense output projection
    bo_ref: (1, OUT_W)    [0   | b1 | 0]
    out_ref:(tm, OUT_W)   slab: lanes [0:H) = hh (relu'd hidden),
                                 lanes [H:H+out_dim) = linear1_node(hh)
    """
    # GCNConv for both gates at once: A_hat @ (X @ W) + b   -> (tm, 2H)
    xw = jnp.dot(x_ref[...], w_ref[...], preferred_element_type=jnp.float32)
    c = jnp.dot(a_ref[...], xw, preferred_element_type=jnp.float32) + b_ref[...]
    # Gate Linear (hidden-state half is zero, dropped): c @ Uc + ub -> (tm, 2H)
    g = jnp.dot(c, uc_ref[...], preferred_element_type=jnp.float32) + ub_ref[...]

    z = jax.nn.sigmoid(g[:, :hidden])
    h_tilde = jnp.tanh(g[:, hidden:])
    # h_new = z*h_prev + (1-z)*h_tilde with h_prev == 0; relu from the loop
    # and the in-place relu_ in forward() collapse into one.
    hh = jnp.maximum((1.0 - z) * h_tilde, 0.0)

    # Single lane-dense store: [hh | hh @ W1 + b1 | 0] in one 128-wide slab.
    out_ref[...] = (jnp.dot(hh, wo_ref[...], preferred_element_type=jnp.float32)
                    + bo_ref[...])


def _pick_row_tile(m):
    """Largest 8-multiple divisor of m (<=256), preferring >=2 tiles so the
    'parallel' grid axis can span v7x's two TensorCores."""
    for t in (256, 128, 64, 32, 16, 8):
        if m % t == 0 and t < m:
            return t
    return m


def fused_tgcn_head(x, a_hat, w2, b2, uc2, ub2, wo, bo, *, hidden):
    m, f = x.shape
    two_h = w2.shape[1]
    out_w = wo.shape[1]
    tm = _pick_row_tile(m)

    kernel = functools.partial(fused_tgcn_head_kernel, hidden=hidden)
    return pl.pallas_call(
        kernel,
        out_shape=jax.ShapeDtypeStruct((m, out_w), jnp.float32),
        grid=(m // tm,),
        in_specs=[
            pl.BlockSpec((m, f), lambda i: (0, 0)),        # x (full: xw needs all nodes)
            pl.BlockSpec((tm, m), lambda i: (i, 0)),       # a_hat row tile
            pl.BlockSpec((f, two_h), lambda i: (0, 0)),    # packed conv weights
            pl.BlockSpec((1, two_h), lambda i: (0, 0)),    # packed conv biases
            pl.BlockSpec((two_h, two_h), lambda i: (0, 0)),  # block-diag gate Linear
            pl.BlockSpec((1, two_h), lambda i: (0, 0)),    # gate Linear biases
            pl.BlockSpec((hidden, out_w), lambda i: (0, 0)),  # [I | W1 | 0]
            pl.BlockSpec((1, out_w), lambda i: (0, 0)),    # [0 | b1 | 0]
        ],
        out_specs=pl.BlockSpec((tm, out_w), lambda i: (i, 0)),
        compiler_params=pltpu.CompilerParams(
            dimension_semantics=("parallel",)),
        # NOTE: at large M, additionally tile a_hat's contraction axis and set
        # vmem_limit_bytes explicitly (v7x has only 64 MiB VMEM).
    )(x, a_hat, w2, b2, uc2, ub2, wo, bo)


# ----------------------------------------------------------------------------
# Plain-JAX glue (adjacency normalization, parameter packing)
# ----------------------------------------------------------------------------
def gcn_norm_dense(edge_index, edge_weight, num_nodes):
    """Dense D^-1/2 (A + I) D^-1/2 matching torch_geometric's gcn_norm
    (flow='source_to_target': adj[dst, src], degree over targets)."""
    src = edge_index[0]
    dst = edge_index[1]
    if edge_weight is None:
        edge_weight = jnp.ones(src.shape[0], dtype=jnp.float32)
    adj = jnp.zeros((num_nodes, num_nodes), dtype=jnp.float32)
    adj = adj.at[dst, src].add(edge_weight)
    adj = adj + jnp.eye(num_nodes, dtype=jnp.float32)  # add self loops (weight 1)
    deg = adj.sum(axis=1)
    dinv = jnp.where(deg > 0, 1.0 / jnp.sqrt(deg), 0.0)
    return dinv[:, None] * adj * dinv[None, :]


def batch_tgcn_forward(node_data, edge_index, edge_data, params, cfg):
    B, N, L, _ = node_data.shape
    M = B * N
    H = cfg["hidden_dim"]
    lookahead = cfg["lookahead_horizon"]
    lb_idx = jnp.asarray(cfg["lookback_indices"], dtype=jnp.int32)
    out_dim = params["w1"].shape[1]

    edge_weights = edge_data if cfg["use_edge_weights"] else None
    a_hat = gcn_norm_dense(edge_index, edge_weights, M)

    # Reference loop passes H=None (zeros) every step and keeps only the last
    # step's output -> compute only i = L-1.
    x_last = jnp.take(node_data[:, :, L - 1, :], lb_idx, axis=2)
    x_last = x_last.reshape(M, -1).astype(jnp.float32)

    # Pack the two live gates (z, h~); r-gate and U_h are dead since h_prev==0.
    w2 = jnp.concatenate([params["w_z"], params["w_c"]], axis=1)       # (F, 2H)
    b2 = jnp.concatenate([params["b_z"], params["b_c"]], axis=1)       # (1, 2H)
    uc2 = jnp.zeros((2 * H, 2 * H), jnp.float32)
    uc2 = uc2.at[:H, :H].set(params["u_z"]).at[H:, H:].set(params["u_c"])
    ub2 = jnp.concatenate([params["ub_z"], params["ub_c"]], axis=1)    # (1, 2H)

    # Lane-dense output projection: slab = hh @ [I_H | W1 | 0] + [0 | b1 | 0].
    out_w = -(-(H + out_dim) // 128) * 128
    wo = jnp.zeros((H, out_w), jnp.float32)
    wo = wo.at[:, :H].set(jnp.eye(H, dtype=jnp.float32))
    wo = wo.at[:, H:H + out_dim].set(params["w1"])
    bo = jnp.zeros((1, out_w), jnp.float32)
    bo = bo.at[:, H:H + out_dim].set(params["b1"])

    slab = fused_tgcn_head(x_last, a_hat, w2, b2, uc2, ub2, wo, bo, hidden=H)

    hh = slab[:, :H]
    h_out = slab[:, H:H + out_dim]
    h_out = h_out.reshape(B, N, lookahead)
    hh = hh.reshape(B, N, H)
    e = edge_weights if cfg["use_edge_weights"] else jnp.zeros((0,), jnp.float32)
    return h_out, e, hh


def xavier_uniform(key, shape):
    fan_in, fan_out = shape[-2], shape[-1]
    lim = (6.0 / (fan_in + fan_out)) ** 0.5
    return jax.random.uniform(key, shape, jnp.float32, -lim, lim)


# ----------------------------------------------------------------------------
# Main
# ----------------------------------------------------------------------------
if __name__ == "__main__":
    cfg = dict(
        batch_size=2,
        node_num=8,
        lookback_horizon=8,
        lookahead_horizon=4,
        node_in_fea_dim=8,
        node_out_fea_dim=1,          # node_output_dim == lookahead_horizon
        hidden_dim=32,
        use_dropout=False,
        use_edge_weights=True,
        lookback_indices=list(range(8)),
    )
    B, N, L, F = (cfg["batch_size"], cfg["node_num"],
                  cfg["lookback_horizon"], cfg["node_in_fea_dim"])
    H = cfg["hidden_dim"]
    out_dim = cfg["lookahead_horizon"] * cfg["node_out_fea_dim"]
    M = B * N

    root = jax.random.PRNGKey(0)
    k = jax.random.split(root, 8)

    # Deterministic parameters (only the gates that are live with h_prev == 0:
    # update gate z and candidate h~; reset gate / hidden-state Linears are dead).
    params = dict(
        w_z=xavier_uniform(k[0], (F, H)),            # GCNConv weight, z gate
        w_c=xavier_uniform(k[1], (F, H)),            # GCNConv weight, h~ gate
        b_z=jnp.zeros((1, H), jnp.float32),
        b_c=jnp.zeros((1, H), jnp.float32),
        u_z=xavier_uniform(k[2], (H, H)),            # gate Linear (conv-output part)
        u_c=xavier_uniform(k[3], (H, H)),
        ub_z=jnp.zeros((1, H), jnp.float32),
        ub_c=jnp.zeros((1, H), jnp.float32),
        w1=xavier_uniform(k[4], (H, out_dim)),       # linear1_node (in, out)
        b1=jnp.zeros((1, out_dim), jnp.float32),
    )

    # Deterministic example inputs.
    node_data = jax.random.normal(k[5], (B, N, L, F), dtype=jnp.float32)

    src, dst = [], []
    for b in range(B):                # ring graph inside each batched sub-graph
        for n in range(N):
            u = b * N + n
            v = b * N + (n + 1) % N
            src += [u, v]
            dst += [v, u]
    edge_index = jnp.asarray([src, dst], dtype=jnp.int32)           # (2, E)
    edge_data = jax.random.uniform(k[6], (edge_index.shape[1],),     # (E,)
                                   jnp.float32, 0.5, 1.5)

    fwd = jax.jit(functools.partial(batch_tgcn_forward, cfg=cfg))
    h, e, hh = fwd(node_data, edge_index, edge_data, params)
    jax.block_until_ready((h, e, hh))

    assert h.shape == (B, N, cfg["lookahead_horizon"])
    assert hh.shape == (B, N, H)
    assert e.shape == (edge_index.shape[1],)
    assert bool(jnp.all(jnp.isfinite(h))) and bool(jnp.all(jnp.isfinite(hh)))
    print("KERNEL_OK")
</pallas_src>

<mosaic_0001>
module attributes {stable_mosaic.version = 11 : i64} {
  func.func private @main(%arg0: i32) attributes {dimension_semantics = [#tpu.dimension_semantics<core_parallel>], iteration_bounds = array<i64: 2>, tpu.core_type = #tpu.core_type<sc_scalar_subcore>, window_params = []} {
    return
  }
}

module attributes {stable_mosaic.version = 11 : i64} {
  func.func private @main(%arg0: i32) attributes {dimension_semantics = [#tpu.dimension_semantics<core_parallel>], iteration_bounds = array<i64: 2>, tpu.core_type = #tpu.core_type<sc_scalar_subcore>, window_params = []} {
    return
  }
}

module attributes {stable_mosaic.version = 11 : i64} {
  func.func @fused_tgcn_head_kernel(%arg0: i32, %arg1: memref<16x8xf32, #tpu.memory_space<vmem>>, %arg2: memref<8x16xf32, #tpu.memory_space<vmem>>, %arg3: memref<8x64xf32, #tpu.memory_space<vmem>>, %arg4: memref<1x64xf32, #tpu.memory_space<vmem>>, %arg5: memref<64x64xf32, #tpu.memory_space<vmem>>, %arg6: memref<1x64xf32, #tpu.memory_space<vmem>>, %arg7: memref<32x128xf32, #tpu.memory_space<vmem>>, %arg8: memref<1x128xf32, #tpu.memory_space<vmem>>, %arg9: memref<8x128xf32, #tpu.memory_space<vmem>>) attributes {dimension_semantics = [#tpu.dimension_semantics<parallel>], iteration_bounds = array<i64: 2>, scalar_prefetch = 0 : i64, scratch_operands = 0 : i64, tpu.core_type = #tpu.core_type<tc>, window_params = [{pipeline_mode = #tpu.pipeline_mode<synchronous>, transform_indices = @transform_0, window_bounds = array<i64: 16, 8>}, {transform_indices = @transform_1, window_bounds = array<i64: 8, 16>}, {pipeline_mode = #tpu.pipeline_mode<synchronous>, transform_indices = @transform_2, window_bounds = array<i64: 8, 64>}, {pipeline_mode = #tpu.pipeline_mode<synchronous>, transform_indices = @transform_3, window_bounds = array<i64: 1, 64>}, {pipeline_mode = #tpu.pipeline_mode<synchronous>, transform_indices = @transform_4, window_bounds = array<i64: 64, 64>}, {pipeline_mode = #tpu.pipeline_mode<synchronous>, transform_indices = @transform_5, window_bounds = array<i64: 1, 64>}, {pipeline_mode = #tpu.pipeline_mode<synchronous>, transform_indices = @transform_6, window_bounds = array<i64: 32, 128>}, {pipeline_mode = #tpu.pipeline_mode<synchronous>, transform_indices = @transform_7, window_bounds = array<i64: 1, 128>}, {transform_indices = @transform_8, window_bounds = array<i64: 8, 128>}]} {
    %c0 = arith.constant 0 : index
    %c0_0 = arith.constant 0 : index
    %0 = vector.load %arg1[%c0, %c0_0] : memref<16x8xf32, #tpu.memory_space<vmem>>, vector<16x8xf32>
    %c0_1 = arith.constant 0 : index
    %c0_2 = arith.constant 0 : index
    %1 = vector.load %arg3[%c0_1, %c0_2] : memref<8x64xf32, #tpu.memory_space<vmem>>, vector<8x64xf32>
    %cst = arith.constant dense<0.000000e+00> : vector<16x64xf32>
    %2 = tpu.matmul %0, %1, %cst {dimension_numbers = #tpu.dot_dimension_numbers<[1], [0], [0], [1], [0, 0, 1, 1], [], []>} : vector<16x8xf32>, vector<8x64xf32>, vector<16x64xf32> -> vector<16x64xf32>
    %c0_3 = arith.constant 0 : index
    %c0_4 = arith.constant 0 : index
    %3 = vector.load %arg2[%c0_3, %c0_4] : memref<8x16xf32, #tpu.memory_space<vmem>>, vector<8x16xf32>
    %cst_5 = arith.constant dense<0.000000e+00> : vector<8x64xf32>
    %4 = tpu.matmul %3, %2, %cst_5 {dimension_numbers = #tpu.dot_dimension_numbers<[1], [0], [0], [1], [0, 0, 1, 1], [], []>} : vector<8x16xf32>, vector<16x64xf32>, vector<8x64xf32> -> vector<8x64xf32>
    %c0_6 = arith.constant 0 : index
    %c0_7 = arith.constant 0 : index
    %5 = vector.load %arg4[%c0_6, %c0_7] : memref<1x64xf32, #tpu.memory_space<vmem>>, vector<1x64xf32>
    %6 = vector.broadcast %5 : vector<1x64xf32> to vector<8x64xf32>
    %7 = arith.addf %4, %6 : vector<8x64xf32>
    %c0_8 = arith.constant 0 : index
    %c0_9 = arith.constant 0 : index
    %8 = vector.load %arg5[%c0_8, %c0_9] : memref<64x64xf32, #tpu.memory_space<vmem>>, vector<64x64xf32>
    %cst_10 = arith.constant dense<0.000000e+00> : vector<8x64xf32>
    %9 = tpu.matmul %7, %8, %cst_10 {dimension_numbers = #tpu.dot_dimension_numbers<[1], [0], [0], [1], [0, 0, 1, 1], [], []>} : vector<8x64xf32>, vector<64x64xf32>, vector<8x64xf32> -> vector<8x64xf32>
    %c0_11 = arith.constant 0 : index
    %c0_12 = arith.constant 0 : index
    %10 = vector.load %arg6[%c0_11, %c0_12] : memref<1x64xf32, #tpu.memory_space<vmem>>, vector<1x64xf32>
    %11 = vector.broadcast %10 : vector<1x64xf32> to vector<8x64xf32>
    %12 = arith.addf %9, %11 : vector<8x64xf32>
    %13 = vector.extract_strided_slice %12 {offsets = [0, 0], sizes = [8, 32], strides = [1, 1]} : vector<8x64xf32> to vector<8x32xf32>
    %14 = arith.negf %13 : vector<8x32xf32>
    %15 = math.exp %14 : vector<8x32xf32>
    %cst_13 = arith.constant 1.000000e+00 : f32
    %16 = vector.broadcast %cst_13 : f32 to vector<8x32xf32>
    %17 = arith.addf %16, %15 : vector<8x32xf32>
    %18 = arith.divf %16, %17 : vector<8x32xf32>
    %19 = vector.extract_strided_slice %12 {offsets = [0, 32], sizes = [8, 32], strides = [1, 1]} : vector<8x64xf32> to vector<8x32xf32>
    %20 = math.tanh %19 : vector<8x32xf32>
    %cst_14 = arith.constant 1.000000e+00 : f32
    %21 = vector.broadcast %cst_14 : f32 to vector<8x32xf32>
    %22 = arith.subf %21, %18 : vector<8x32xf32>
    %23 = arith.mulf %22, %20 : vector<8x32xf32>
    %cst_15 = arith.constant 0.000000e+00 : f32
    %24 = vector.broadcast %cst_15 : f32 to vector<8x32xf32>
    %25 = arith.maximumf %23, %24 : vector<8x32xf32>
    %c0_16 = arith.constant 0 : index
    %c0_17 = arith.constant 0 : index
    %26 = vector.load %arg7[%c0_16, %c0_17] : memref<32x128xf32, #tpu.memory_space<vmem>>, vector<32x128xf32>
    %cst_18 = arith.constant dense<0.000000e+00> : vector<8x128xf32>
    %27 = tpu.matmul %25, %26, %cst_18 {dimension_numbers = #tpu.dot_dimension_numbers<[1], [0], [0], [1], [0, 0, 1, 1], [], []>} : vector<8x32xf32>, vector<32x128xf32>, vector<8x128xf32> -> vector<8x128xf32>
    %c0_19 = arith.constant 0 : index
    %c0_20 = arith.constant 0 : index
    %28 = vector.load %arg8[%c0_19, %c0_20] : memref<1x128xf32, #tpu.memory_space<vmem>>, vector<1x128xf32>
    %29 = vector.broadcast %28 : vector<1x128xf32> to vector<8x128xf32>
    %30 = arith.addf %27, %29 : vector<8x128xf32>
    %c0_21 = arith.constant 0 : index
    %c0_22 = arith.constant 0 : index
    %31 = vector.load %arg9[%c0_21, %c0_22] : memref<8x128xf32, #tpu.memory_space<vmem>>, vector<8x128xf32>
    tpu.vector_store %arg9[%c0_21, %c0_22], %30 {strides = array<i32>} : memref<8x128xf32, #tpu.memory_space<vmem>>, vector<8x128xf32>,
    return
  }
  func.func @transform_0(%arg0: i32) -> (i32, i32) {
    %c0_i32 = arith.constant 0 : i32
    %c0_i32_0 = arith.constant 0 : i32
    %c0_i32_1 = arith.constant 0 : i32
    return %c0_i32, %c0_i32_0 : i32, i32
  }
  func.func @transform_1(%arg0: i32) -> (i32, i32) {
    %c0_i32 = arith.constant 0 : i32
    %c0_i32_0 = arith.constant 0 : i32
    return %arg0, %c0_i32 : i32, i32
  }
  func.func @transform_2(%arg0: i32) -> (i32, i32) {
    %c0_i32 = arith.constant 0 : i32
    %c0_i32_0 = arith.constant 0 : i32
    %c0_i32_1 = arith.constant 0 : i32
    return %c0_i32, %c0_i32_0 : i32, i32
  }
  func.func @transform_3(%arg0: i32) -> (i32, i32) {
    %c0_i32 = arith.constant 0 : i32
    %c0_i32_0 = arith.constant 0 : i32
    %c0_i32_1 = arith.constant 0 : i32
    return %c0_i32, %c0_i32_0 : i32, i32
  }
  func.func @transform_4(%arg0: i32) -> (i32, i32) {
    %c0_i32 = arith.constant 0 : i32
    %c0_i32_0 = arith.constant 0 : i32
    %c0_i32_1 = arith.constant 0 : i32
    return %c0_i32, %c0_i32_0 : i32, i32
  }
  func.func @transform_5(%arg0: i32) -> (i32, i32) {
    %c0_i32 = arith.constant 0 : i32
    %c0_i32_0 = arith.constant 0 : i32
    %c0_i32_1 = arith.constant 0 : i32
    return %c0_i32, %c0_i32_0 : i32, i32
  }
  func.func @transform_6(%arg0: i32) -> (i32, i32) {
    %c0_i32 = arith.constant 0 : i32
    %c0_i32_0 = arith.constant 0 : i32
    %c0_i32_1 = arith.constant 0 : i32
    return %c0_i32, %c0_i32_0 : i32, i32
  }
  func.func @transform_7(%arg0: i32) -> (i32, i32) {
    %c0_i32 = arith.constant 0 : i32
    %c0_i32_0 = arith.constant 0 : i32
    %c0_i32_1 = arith.constant 0 : i32
    return %c0_i32, %c0_i32_0 : i32, i32
  }
  func.func @transform_8(%arg0: i32) -> (i32, i32) {
    %c0_i32 = arith.constant 0 : i32
    %c0_i32_0 = arith.constant 0 : i32
    return %arg0, %c0_i32 : i32, i32
  }
}

</mosaic_0001>

<bundles_post_ra>
// kernel: batch_tgcn_forward.1
= control target key start
LH: loop header
LB: loop body
LE: loop exit
PB: predicated region body
PF: predicated region fallthrough
CT: control target
= control target key end

     0   :  { %s886_s27 = smov 0   ;;  %s971_s0 = inlined_call_operand.vmem [shape: f32[16,8], index: 0, kind: input, shape index: {}]   ;;  %s972_s1 = inlined_call_operand.vmem [shape: f32[16,16], index: 1, kind: input, shape index: {}]   ;;  %s973_s2 = inlined_call_operand.vmem [shape: f32[8,64], index: 2, kind: input, shape index: {}]   ;;  %s974_s3 = inlined_call_operand.vmem [shape: f32[1,64], index: 3, kind: input, shape index: {}]   ;;  %s975_s4 = inlined_call_operand.vmem [shape: f32[64,64], index: 4, kind: input, shape index: {}]   ;;  %s976_s5 = inlined_call_operand.vmem [shape: f32[1,64], index: 5, kind: input, shape index: {}]   ;;  %s977_s6 = inlined_call_operand.vmem [shape: f32[32,128], index: 6, kind: input, shape index: {}]   ;;  %s978_s7 = inlined_call_operand.vmem [shape: f32[1,128], index: 7, kind: input, shape index: {}]   ;;  %s979_s8 = inlined_call_operand.vmem [shape: f32[16,128], index: 8, kind: output, shape index: {}]  }
   0x1 LB: > { %s710_s28 = sadd.s32 4294967295, %s835_s27   ;;  %p714_p0 = scmp.ge.s32.totalorder %s835_s27, 1  ;;  %s835_s27 = sphi %s886_s27, %s18_s27  }
   0x2   : > { %p261_p1 = scmp.lt.s32.totalorder %s835_s27, 3 }
   0x4   : > { %p262_p2 = pnand %p714_p0, %p261_p1 }
   0x5   : > { %v303_v0 = vld [vmem:[%s973_s2] sm:$0xff] (!%p262_p2)  ;;  %vm304_vm0 = vcmask (!%p262_p2), 64512   ;;  %v302_v2 = vld [vmem:[%s971_s0 + $0x8] sm:$0xff] (!%p262_p2)  ;;  %v837_v3 = vmov (!%p262_p2), 0.0|0.0   ;;  %vm838_vm1 = vmmov (!%p262_p2), 0   ;;  %v839_v4 = vmov (!%p262_p2), 0.0  }
   0x6   : > { %265 = sbr.rel (%p262_p2) target bundleno = 999 (0x3e7), region = 52  ;;  %v301_v1 = vld [vmem:[%s971_s0] sm:$0xff] (!%p262_p2)  ;;  %748 = vmatprep.subr.mxu1 (!%p262_p2), %v303_v0  ;;  %793 = vmatprep.subr.bf16.mxu0 (!%p262_p2), %v837_v3  ;;  %v469_v6 = vld [vmem:[%s975_s4 + $0x8] sm:$0xff] (!%p262_p2)  ;;  %v470_v7 = vld [vmem:[%s975_s4 + $0x10] sm:$0xff] (!%p262_p2)  ;;  %p293_p3 = scmp.lt.s32.totalorder (!%p262_p2), %s710_s28, 1  ;;  %vm394_vm2 = vcmask (!%p262_p2), 130048  }
   0x7   : > { %750 = vmatprep.mubr.msk.f32.mxu1 (!%p262_p2), %vm304_vm0, %v301_v1  ;;  %749 = vmatpush3.msra.mxu1 (!%p262_p2), %v303_v0  ;;  %v468_v5 = vld [vmem:[%s975_s4] sm:$0xff] (!%p262_p2)  ;;  %v471_v9 = vld [vmem:[%s975_s4 + $0x18] sm:$0xff] (!%p262_p2)  ;;  %v473_v12 = vld [vmem:[%s975_s4 + $0x28] sm:$0xff] (!%p262_p2)  ;;  %vm483_vm3 = vcmask (!%p262_p2), 523264   ;;  %s840_s26 = smov (!%p262_p2), 96   ;;  %vm582_vm4 = vcmask (!%p262_p2), 261120  }
   0x8   : > { %751 = vmatmul.mubr.msk.f32.vlgmr.msra.gmra.mrb[0].mxu1 (!%p262_p2), %vm304_vm0, %v302_v2  ;;  %790 = vmatprep.subr.bf16.mxu1 (!%p262_p2), %v837_v3  ;;  %v794_v8 = vpack.c.bf16 (!%p262_p2), %v469_v6, %v468_v5  ;;  %v797_v10 = vpack.c.bf16 (!%p262_p2), %v471_v9, %v470_v7  ;;  %v472_v11 = vld [vmem:[%s975_s4 + $0x20] sm:$0xff] (!%p262_p2)  ;;  %v474_v18 = vld [vmem:[%s975_s4 + $0x30] sm:$0xff] (!%p262_p2)  ;;  %v475_v19 = vld [vmem:[%s975_s4 + $0x38] sm:$0xff] (!%p262_p2) }
   0x9   : > { %757 = vmatprep.mubr.msk.f32.mxu1 (!%p262_p2), %vm838_vm1, %v839_v4  ;;  %776 = vmatprep.mubr.msk.f32.mxu0 (!%p262_p2), %vm838_vm1, %v839_v4  ;;  %v800_v13 = vpack.c.bf16 (!%p262_p2), %v473_v12, %v472_v11  ;;  %v803_v20 = vpack.c.bf16 (!%p262_p2), %v475_v19, %v474_v18  ;;  %v719_v21 = vld [vmem:[%s974_s3] ss:$0 sm:$0xff] (!%p262_p2)  ;;  %v572_v26 = vld [vmem:[%s977_s6 + $0x8] sm:$0xff] (!%p262_p2)  ;;  %v573_v29 = vld [vmem:[%s977_s6 + $0x10] sm:$0xff] (!%p262_p2) }
   0xa   : > { %795 = vmatpush3.bf16.msra.mxu0 (!%p262_p2), %v794_v8  ;;  %v571_v25 = vld [vmem:[%s977_s6] sm:$0xff] (!%p262_p2)  ;;  %v574_v30 = vld [vmem:[%s977_s6 + $0x18] sm:$0xff] (!%p262_p2) }
   0xb   : > { %796 = vmatprep.subr.bf16.mxu0 (!%p262_p2), %v837_v3  ;;  %v806_v27 = vpack.c.bf16 (!%p262_p2), %v572_v26, %v571_v25  ;;  %v721_v28 = vld [vmem:[%s976_s5] ss:$0 sm:$0xff] (!%p262_p2)  ;;  %v809_v32 = vpack.c.bf16 (!%p262_p2), %v574_v30, %v573_v29 }
   0xc   : > { %v724_v44 = vld [vmem:[%s978_s7] ss:$0 sm:$0xff] (!%p262_p2) }
   0xd   : > { %s981_s28 = smov (!%p293_p3, %s710_s28), 1 }
   0xe   : > { %798 = vmatpush3.bf16.msra.mxu0 %v797_v10  ;;  %s715_s25 = sshll.u32 %s981_s28, 3 }
   0xf   : > { %799 = vmatprep.subr.bf16.mxu0 %v837_v3  ;;  %s296_s30 = scalar_lea.vmem %s972_s1, %s715_s25  ;;  %s300_s11 = scalar_lea.vmem %s979_s8, %s715_s25 }
  0x10   : > { %v386_v17 = vld [vmem:[%s296_s30] sm:$0xff] }
  0x12   : > { %801 = vmatpush3.bf16.msra.mxu0 %v800_v13 }
  0x13   : > { %802 = vmatprep.subr.bf16.mxu0 %v837_v3 }
  0x16   : > { %804 = vmatpush3.bf16.msra.mxu0 %v803_v20 }
  0xdb   : > { %v752_v14 = vpop.f32.mrb[0].mxu1 }
  0xdc   : > { %v377_v15 = vpop.f32.mrb[1].mxu1 }
  0xdd   : > { %v791_v16 = vpack.c.bf16 %v752_v14, %v377_v15 }
  0xdf   : > { %792 = vmatpush3.bf16.msra.mxu1 %v791_v16 }
  0xe0   : > { %805 = vmatprep.subr.bf16.mxu1 %v837_v3 }
  0xe2   : > { %758 = vmatmul.mubr.msk.f32.vlgmr.msra.gmra.mrb[2].mxu1 %vm394_vm2, %v386_v17 }
  0xe3   : > { %787 = vmatprep.mubr.msk.f32.mxu1 %vm838_vm1, %v839_v4  ;;  %807 = vmatpush3.bf16.msra.mxu1 %v806_v27 }
  0xe4   : > { %808 = vmatprep.subr.bf16.mxu1 %v837_v3 }
  0xe7   : > { %810 = vmatpush3.bf16.msra.mxu1 %v809_v32 }
 0x1b5   : > { %v464_v22 = vpop.f32.mrb[2].mxu1 }
 0x1b6   : > { %v465_v23 = vadd.f32 %v719_v21, %v464_v22  ;;  %v759_v24 = vpop.f32.mrb[3].mxu1 }
 0x1b8   : > { %777 = vmatmul.mubr.msk.f32.vlgmr.msra.gmra.mrb[0].mxu0 %vm483_vm3, %v465_v23 }
 0x28b   : > { %v553_v31 = vpop.f32.mrb[0].mxu0 }
 0x28c   : > { %v554_v33 = vadd.f32 %v721_v28, %v553_v31  ;;  %v778_v34 = vpop.f32.mrb[1].mxu0 }
 0x28e   : > { %823 = vtanh.f32 %v554_v33  ;;  %v723_v36 = vmul.f32 -1.442695, %v554_v33 }
 0x290   : > { %825 = vpow2.f32 %v723_v36 }
 0x298   : > { %v824_v35 = vpop.eup %823 }
 0x299   : > { %566 = vrot.lane.b32.xlu0 %v824_v35, %s840_s26 }
 0x29a   : > { %v826_v37 = vpop.eup %825 }
 0x29b   : > { %v560_v38 = vadd.f32 1.0, %v826_v37 }
 0x29d   : > { %827 = vrcp.f32 %v560_v38 }
 0x2a7   : > { %v828_v39 = vpop.eup %827 }
 0x2a8   : > { %v564_v40 = vsub.f32 1.0, %v828_v39 }
 0x30b   : > { %v567_v41 = vpop.permute.xlu0 %566 }
 0x30c   : > { %v569_v42 = vmul.f32 %v567_v41, %v564_v40 }
 0x30e   : > { %v570_v43 = vmax.f32 %v569_v42, 0.0 }
 0x310   : > { %788 = vmatmul.mubr.msk.f32.vlgmr.msra.gmra.mrb[4].mxu1 %vm582_vm4, %v570_v43 }
 0x3e3   : > { %v652_v45 = vpop.f32.mrb[4].mxu1 }
 0x3e4   : > { %v653_v46 = vadd.f32 %v724_v44, %v652_v45  ;;  %v789_v47 = vpop.f32.mrb[5].mxu1 }
 0x3e6   : > { %656 = vst [vmem:[%s300_s11] sm:$0xff] %v653_v46 }
 0x3e7 PF: > { %s18_s27 = sadd.s32 1, %s835_s27  }
 0x3e8   : > { %p15_p4 = scmp.ge.s32.totalorder %s18_s27, 4  }
 0x3ea   :  { %17 = sbr.rel (!%p15_p4) target bundleno = 1 (0x1), region = 82 }

</bundles_post_ra>
